<compile_context>
chip_gen: v7x
topology: tpu7x:2x2x1
jax: 0.10.0
libtpu: 0.0.40
codegen_flags: <defaults>
</compile_context>

<pallas_src>
import functools

import jax
import jax.numpy as jnp
from jax import lax
from jax.experimental import pallas as pl
from jax.experimental.pallas import tpu as pltpu

NEG_SLOPE = 0.2
_C1_OUT = 20            # conv1 output channels
_C2_OUT = 30            # conv2 output channels
_TAP_STRIDE = 128       # lane stride per pool tap (128-aligned -> tile-aligned slices)
_W1_COLS = 4 * _TAP_STRIDE   # 512


def _lrelu(v):
    # leaky_relu(v, 0.2) == max(v, 0.2*v) for slope < 1
    return jnp.maximum(v, NEG_SLOPE * v)


def policy_cnn_kernel(x_ref, w1_ref, b1_ref, w2_ref, b2_ref,
                      w3_ref, b3_ref, w4_ref, b4_ref, w5_ref, b5_ref,
                      out_ref, *, compute_dtype):
    # Cast the f32 input tile to the MXU operand dtype inside the kernel (no wrapper cast).
    x = x_ref[...].astype(compute_dtype)

    # conv1 + MaxPool2d(2,1) fused: 4 matmuls (one per pool tap) with a running max.
    # Each tap's 128-lane column block of w1 holds the conv1 weights for the spatial
    # position read by that (pool window, tap).  Only (tb,128) f32 intermediates live.
    pooled = jnp.dot(x, w1_ref[:, 0:_TAP_STRIDE], preferred_element_type=jnp.float32)
    for t in range(1, 4):
        pooled = jnp.maximum(
            pooled,
            jnp.dot(x, w1_ref[:, t * _TAP_STRIDE:(t + 1) * _TAP_STRIDE],
                    preferred_element_type=jnp.float32))

    # Bias + leaky_relu once on the pooled (tb,128) tile.  Exact because the conv1 bias
    # is identical in every tap block and leaky_relu is monotone increasing.
    pooled = _lrelu(pooled + b1_ref[...])

    # conv2 (2x2, valid -> 1x1) as a single matmul with zero-padded K=128.
    h = _lrelu(jnp.dot(pooled.astype(compute_dtype), w2_ref[...],
                       preferred_element_type=jnp.float32) + b2_ref[...])
    # fc1 -> fc2 -> fc3 (elementwise kept in f32; only MXU operands are compute_dtype).
    h = _lrelu(jnp.dot(h.astype(compute_dtype), w3_ref[...],
                       preferred_element_type=jnp.float32) + b3_ref[...])
    h = _lrelu(jnp.dot(h.astype(compute_dtype), w4_ref[...],
                       preferred_element_type=jnp.float32) + b4_ref[...])
    out_ref[...] = (jnp.dot(h.astype(compute_dtype), w5_ref[...],
                            preferred_element_type=jnp.float32)
                    + b5_ref[...]).astype(out_ref.dtype)


def pack_params(params, compute_dtype=jnp.bfloat16):
    """Repack PyTorch-layout PolicyCNN params into fused, kernel-friendly matrices."""
    w1 = params["conv1_w"].astype(jnp.float32)   # (20, cin, 3, 3)
    b1 = params["conv1_b"].astype(jnp.float32)   # (20,)
    w2 = params["conv2_w"].astype(jnp.float32)   # (30, 20, 2, 2)
    b2 = params["conv2_b"].astype(jnp.float32)   # (30,)
    out_c1, cin, _, _ = w1.shape
    c9 = cin * 9

    # conv1 as a structured matmul: column block [t*128 + w*20 : +20] = conv1 weights of
    # the spatial output position (oh,ow) = (w//2 + t//2, w%2 + t%2) (pad=1 baked in).
    w1_big = jnp.zeros((c9, _W1_COLS), jnp.float32)
    for t in range(4):                      # pool tap (dh, dw)
        dh, dw = t // 2, t % 2
        for w in range(4):                  # pool window (i, j)
            i, j = w // 2, w % 2
            oh, ow = i + dh, j + dw         # conv1 output position this (w, t) reads
            blk = jnp.zeros((cin, 3, 3, out_c1), jnp.float32)
            for ih in range(3):
                kh = ih - oh + 1
                if not 0 <= kh <= 2:
                    continue
                for iw in range(3):
                    kw = iw - ow + 1
                    if not 0 <= kw <= 2:
                        continue
                    blk = blk.at[:, ih, iw, :].set(w1[:, :, kh, kw].T)
            col = t * _TAP_STRIDE + w * out_c1
            w1_big = w1_big.at[:, col:col + out_c1].set(blk.reshape(c9, out_c1))

    # conv1 bias is added AFTER the pool: one copy per pool window w (lanes >=80 are pad).
    b1_pool = jnp.zeros((1, _TAP_STRIDE), jnp.float32)
    for w in range(4):
        b1_pool = b1_pool.at[0, w * out_c1:(w + 1) * out_c1].set(b1)

    # conv2 as one matmul over the pooled 128-lane tile (rows >= 80 are zero padding).
    w2_all = jnp.zeros((_TAP_STRIDE, _C2_OUT), jnp.float32)
    for w in range(4):
        kh, kw = w // 2, w % 2
        w2_all = w2_all.at[w * out_c1:(w + 1) * out_c1, :].set(w2[:, :, kh, kw].T)

    cd = compute_dtype
    return {
        "cin": int(cin),
        "w1": w1_big.astype(cd), "b1": b1_pool,
        "w2": w2_all.astype(cd), "b2": b2.reshape(1, -1),
        "w3": params["fc1_w"].T.astype(cd),
        "b3": params["fc1_b"].reshape(1, -1).astype(jnp.float32),
        "w4": params["fc2_w"].T.astype(cd),
        "b4": params["fc2_b"].reshape(1, -1).astype(jnp.float32),
        "w5": params["fc3_w"].T.astype(cd),
        "b5": params["fc3_b"].reshape(1, -1).astype(jnp.float32),
    }


def _num_tensorcores():
    """Best-effort TensorCores-per-chip: 2 on v7x / megacore parts, else 1."""
    try:
        kind = jax.devices()[0].device_kind.lower()
    except Exception:
        return 1
    if any(tag in kind for tag in ("v7", "v5p", "v4")):
        return 2
    return 1


def policy_cnn_forward(x, packed, *, tb=2048):
    """x: (B, cin, 3, 3) float32 (NCHW, like PyTorch). Returns (B, action_num) float32."""
    B, cin, H, W = x.shape
    assert (H, W) == (3, 3) and cin == packed["cin"]
    c9 = cin * 9
    action_num = packed["b5"].shape[1]
    cdt = packed["w1"].dtype

    # Batch tiling: cdiv grid + zero padding (no divisibility requirement on B).
    # Only on 2-TensorCore parts force an even number of >=2 steps so both cores get
    # balanced work; on 1-TC chips the grid is a serial loop, so use the biggest tiles.
    if _num_tensorcores() >= 2 and B > 8:
        grid_n = max(2, pl.cdiv(B, tb))
        grid_n = (grid_n + 1) // 2 * 2
    else:
        grid_n = max(1, pl.cdiv(B, tb))
    tb_eff = (pl.cdiv(B, grid_n) + 7) // 8 * 8   # sublane-aligned tile
    bp = grid_n * tb_eff

    # Input stays f32; the kernel casts to compute_dtype (no wrapper-side astype).
    x_flat = x.reshape(B, c9)
    if bp != B:
        x_flat = jnp.pad(x_flat, ((0, bp - B), (0, 0)))

    def wspec(arr):  # whole weight resident in VMEM; constant index -> fetched once
        return pl.BlockSpec(arr.shape, lambda b: (0, 0))

    weight_keys = ("w1", "b1", "w2", "b2", "w3", "b3", "w4", "b4", "w5", "b5")
    out = pl.pallas_call(
        functools.partial(policy_cnn_kernel, compute_dtype=cdt),
        out_shape=jax.ShapeDtypeStruct((bp, action_num), jnp.float32),
        grid=(grid_n,),
        in_specs=[pl.BlockSpec((tb_eff, c9), lambda b: (b, 0))]
                 + [wspec(packed[k]) for k in weight_keys],
        out_specs=pl.BlockSpec((tb_eff, action_num), lambda b: (b, 0)),
        compiler_params=pltpu.CompilerParams(
            dimension_semantics=("parallel",),
            vmem_limit_bytes=32 * 1024 * 1024),
    )(x_flat, *[packed[k] for k in weight_keys])
    return out[:B]


# ---------------- deterministic parameter init (shapes from PolicyCNN.__init__) -----------
def init_params(key, input_dim, action_num):
    cin = input_dim + 1   # the module re-creates conv1 with (input_dim + 1) input channels
    ks = jax.random.split(key, 10)

    def w(k, shape, fan_in):
        return jax.random.normal(k, shape, jnp.float32) * (1.0 / jnp.sqrt(fan_in))

    return {
        "conv1_w": w(ks[0], (20, cin, 3, 3), cin * 9),
        "conv1_b": w(ks[1], (20,), cin * 9),
        "conv2_w": w(ks[2], (30, 20, 2, 2), 20 * 4),
        "conv2_b": w(ks[3], (30,), 20 * 4),
        "fc1_w":   w(ks[4], (120, 30), 30),
        "fc1_b":   w(ks[5], (120,), 30),
        "fc2_w":   w(ks[6], (84, 120), 120),
        "fc2_b":   w(ks[7], (84,), 120),
        "fc3_w":   w(ks[8], (action_num, 84), 84),
        "fc3_b":   w(ks[9], (action_num,), 84),
    }


# ---------------- pure-JAX reference of PolicyCNN.forward (for validation) ----------------
def reference_forward(x, params):
    def lrelu(v):
        return jnp.where(v > 0, v, NEG_SLOPE * v)

    y = lax.conv_general_dilated(x, params["conv1_w"], (1, 1), ((1, 1), (1, 1)),
                                 dimension_numbers=("NCHW", "OIHW", "NCHW"))
    y = lrelu(y + params["conv1_b"][None, :, None, None])
    y = lax.reduce_window(y, -jnp.inf, lax.max, (1, 1, 2, 2), (1, 1, 1, 1), "VALID")
    y = lax.conv_general_dilated(y, params["conv2_w"], (1, 1), "VALID",
                                 dimension_numbers=("NCHW", "OIHW", "NCHW"))
    y = lrelu(y + params["conv2_b"][None, :, None, None])
    y = y.reshape(-1, 30)
    y = lrelu(y @ params["fc1_w"].T + params["fc1_b"])
    y = lrelu(y @ params["fc2_w"].T + params["fc2_b"])
    y = y @ params["fc3_w"].T + params["fc3_b"]
    return y


if __name__ == "__main__":
    key = jax.random.PRNGKey(0)
    input_dim, action_num = 4, 8          # process_features -> 3x3 spatial, cin = input_dim + 1
    cin = input_dim + 1
    k_param, k_x1, k_x2 = jax.random.split(key, 3)
    params = init_params(k_param, input_dim, action_num)

    # --- check 1: f32 MXU path, small batch (single large tile on 1-TC parts) ---
    x1 = jax.random.normal(k_x1, (16, cin, 3, 3), jnp.float32)
    packed_f32 = pack_params(params, compute_dtype=jnp.float32)
    out1 = jax.block_until_ready(policy_cnn_forward(x1, packed_f32))
    ref1 = reference_forward(x1, params)
    assert out1.shape == (16, action_num)
    assert jnp.allclose(out1, ref1, rtol=1e-3, atol=1e-3), \
        f"f32 max abs diff {jnp.max(jnp.abs(out1 - ref1))}"

    # --- check 2: bf16 MXU operands (deployment path), ragged batch (padding + multi-step grid) ---
    x2 = jax.random.normal(k_x2, (300, cin, 3, 3), jnp.float32)
    packed_bf16 = pack_params(params, compute_dtype=jnp.bfloat16)
    out2 = jax.block_until_ready(policy_cnn_forward(x2, packed_bf16, tb=256))
    ref2 = reference_forward(x2, params)
    assert out2.shape == (300, action_num)
    assert jnp.allclose(out2, ref2, rtol=5e-2, atol=5e-2), \
        f"bf16 max abs diff {jnp.max(jnp.abs(out2 - ref2))}"

    print("KERNEL_OK")
</pallas_src>

<mosaic_0001>
module attributes {stable_mosaic.version = 11 : i64} {
  func.func @policy_cnn_kernel(%arg0: i32, %arg1: memref<16x45xf32, #tpu.memory_space<vmem>>, %arg2: memref<45x512xf32, #tpu.memory_space<vmem>>, %arg3: memref<1x128xf32, #tpu.memory_space<vmem>>, %arg4: memref<128x30xf32, #tpu.memory_space<vmem>>, %arg5: memref<1x30xf32, #tpu.memory_space<vmem>>, %arg6: memref<30x120xf32, #tpu.memory_space<vmem>>, %arg7: memref<1x120xf32, #tpu.memory_space<vmem>>, %arg8: memref<120x84xf32, #tpu.memory_space<vmem>>, %arg9: memref<1x84xf32, #tpu.memory_space<vmem>>, %arg10: memref<84x8xf32, #tpu.memory_space<vmem>>, %arg11: memref<1x8xf32, #tpu.memory_space<vmem>>, %arg12: memref<16x8xf32, #tpu.memory_space<vmem>>) attributes {dimension_semantics = [#tpu.dimension_semantics<parallel>], iteration_bounds = array<i64: 1>, scalar_prefetch = 0 : i64, scratch_operands = 0 : i64, tpu.core_type = #tpu.core_type<tc>, window_params = [{transform_indices = @transform_0, window_bounds = array<i64: 16, 45>}, {pipeline_mode = #tpu.pipeline_mode<synchronous>, transform_indices = @transform_1, window_bounds = array<i64: 45, 512>}, {pipeline_mode = #tpu.pipeline_mode<synchronous>, transform_indices = @transform_2, window_bounds = array<i64: 1, 128>}, {pipeline_mode = #tpu.pipeline_mode<synchronous>, transform_indices = @transform_3, window_bounds = array<i64: 128, 30>}, {pipeline_mode = #tpu.pipeline_mode<synchronous>, transform_indices = @transform_4, window_bounds = array<i64: 1, 30>}, {pipeline_mode = #tpu.pipeline_mode<synchronous>, transform_indices = @transform_5, window_bounds = array<i64: 30, 120>}, {pipeline_mode = #tpu.pipeline_mode<synchronous>, transform_indices = @transform_6, window_bounds = array<i64: 1, 120>}, {pipeline_mode = #tpu.pipeline_mode<synchronous>, transform_indices = @transform_7, window_bounds = array<i64: 120, 84>}, {pipeline_mode = #tpu.pipeline_mode<synchronous>, transform_indices = @transform_8, window_bounds = array<i64: 1, 84>}, {pipeline_mode = #tpu.pipeline_mode<synchronous>, transform_indices = @transform_9, window_bounds = array<i64: 84, 8>}, {pipeline_mode = #tpu.pipeline_mode<synchronous>, transform_indices = @transform_10, window_bounds = array<i64: 1, 8>}, {transform_indices = @transform_11, window_bounds = array<i64: 16, 8>}]} {
    %c0 = arith.constant 0 : index
    %c0_0 = arith.constant 0 : index
    %0 = vector.load %arg1[%c0, %c0_0] : memref<16x45xf32, #tpu.memory_space<vmem>>, vector<16x45xf32>
    %c0_1 = arith.constant 0 : index
    %c0_2 = arith.constant 0 : index
    %1 = vector.load %arg2[%c0_1, %c0_2] : memref<45x512xf32, #tpu.memory_space<vmem>>, vector<45x128xf32>
    %cst = arith.constant dense<0.000000e+00> : vector<16x128xf32>
    %2 = tpu.matmul %0, %1, %cst {dimension_numbers = #tpu.dot_dimension_numbers<[1], [0], [0], [1], [0, 0, 1, 1], [], []>} : vector<16x45xf32>, vector<45x128xf32>, vector<16x128xf32> -> vector<16x128xf32>
    %c0_3 = arith.constant 0 : index
    %c128 = arith.constant 128 : index
    %3 = vector.load %arg2[%c0_3, %c128] : memref<45x512xf32, #tpu.memory_space<vmem>>, vector<45x128xf32>
    %cst_4 = arith.constant dense<0.000000e+00> : vector<16x128xf32>
    %4 = tpu.matmul %0, %3, %cst_4 {dimension_numbers = #tpu.dot_dimension_numbers<[1], [0], [0], [1], [0, 0, 1, 1], [], []>} : vector<16x45xf32>, vector<45x128xf32>, vector<16x128xf32> -> vector<16x128xf32>
    %5 = arith.maximumf %2, %4 : vector<16x128xf32>
    %c0_5 = arith.constant 0 : index
    %c256 = arith.constant 256 : index
    %6 = vector.load %arg2[%c0_5, %c256] : memref<45x512xf32, #tpu.memory_space<vmem>>, vector<45x128xf32>
    %cst_6 = arith.constant dense<0.000000e+00> : vector<16x128xf32>
    %7 = tpu.matmul %0, %6, %cst_6 {dimension_numbers = #tpu.dot_dimension_numbers<[1], [0], [0], [1], [0, 0, 1, 1], [], []>} : vector<16x45xf32>, vector<45x128xf32>, vector<16x128xf32> -> vector<16x128xf32>
    %8 = arith.maximumf %5, %7 : vector<16x128xf32>
    %c0_7 = arith.constant 0 : index
    %c384 = arith.constant 384 : index
    %9 = vector.load %arg2[%c0_7, %c384] : memref<45x512xf32, #tpu.memory_space<vmem>>, vector<45x128xf32>
    %cst_8 = arith.constant dense<0.000000e+00> : vector<16x128xf32>
    %10 = tpu.matmul %0, %9, %cst_8 {dimension_numbers = #tpu.dot_dimension_numbers<[1], [0], [0], [1], [0, 0, 1, 1], [], []>} : vector<16x45xf32>, vector<45x128xf32>, vector<16x128xf32> -> vector<16x128xf32>
    %11 = arith.maximumf %8, %10 : vector<16x128xf32>
    %c0_9 = arith.constant 0 : index
    %c0_10 = arith.constant 0 : index
    %12 = vector.load %arg3[%c0_9, %c0_10] : memref<1x128xf32, #tpu.memory_space<vmem>>, vector<1x128xf32>
    %13 = vector.broadcast %12 : vector<1x128xf32> to vector<16x128xf32>
    %14 = arith.addf %11, %13 : vector<16x128xf32>
    %cst_11 = arith.constant 2.000000e-01 : f32
    %15 = vector.broadcast %cst_11 : f32 to vector<16x128xf32>
    %16 = arith.mulf %15, %14 : vector<16x128xf32>
    %17 = arith.maximumf %14, %16 : vector<16x128xf32>
    %c0_12 = arith.constant 0 : index
    %c0_13 = arith.constant 0 : index
    %18 = vector.load %arg4[%c0_12, %c0_13] : memref<128x30xf32, #tpu.memory_space<vmem>>, vector<128x30xf32>
    %cst_14 = arith.constant dense<0.000000e+00> : vector<16x30xf32>
    %19 = tpu.matmul %17, %18, %cst_14 {dimension_numbers = #tpu.dot_dimension_numbers<[1], [0], [0], [1], [0, 0, 1, 1], [], []>} : vector<16x128xf32>, vector<128x30xf32>, vector<16x30xf32> -> vector<16x30xf32>
    %c0_15 = arith.constant 0 : index
    %c0_16 = arith.constant 0 : index
    %20 = vector.load %arg5[%c0_15, %c0_16] : memref<1x30xf32, #tpu.memory_space<vmem>>, vector<1x30xf32>
    %21 = vector.broadcast %20 : vector<1x30xf32> to vector<16x30xf32>
    %22 = arith.addf %19, %21 : vector<16x30xf32>
    %cst_17 = arith.constant 2.000000e-01 : f32
    %23 = vector.broadcast %cst_17 : f32 to vector<16x30xf32>
    %24 = arith.mulf %23, %22 : vector<16x30xf32>
    %25 = arith.maximumf %22, %24 : vector<16x30xf32>
    %c0_18 = arith.constant 0 : index
    %c0_19 = arith.constant 0 : index
    %26 = vector.load %arg6[%c0_18, %c0_19] : memref<30x120xf32, #tpu.memory_space<vmem>>, vector<30x120xf32>
    %cst_20 = arith.constant dense<0.000000e+00> : vector<16x120xf32>
    %27 = tpu.matmul %25, %26, %cst_20 {dimension_numbers = #tpu.dot_dimension_numbers<[1], [0], [0], [1], [0, 0, 1, 1], [], []>} : vector<16x30xf32>, vector<30x120xf32>, vector<16x120xf32> -> vector<16x120xf32>
    %c0_21 = arith.constant 0 : index
    %c0_22 = arith.constant 0 : index
    %28 = vector.load %arg7[%c0_21, %c0_22] : memref<1x120xf32, #tpu.memory_space<vmem>>, vector<1x120xf32>
    %29 = vector.broadcast %28 : vector<1x120xf32> to vector<16x120xf32>
    %30 = arith.addf %27, %29 : vector<16x120xf32>
    %cst_23 = arith.constant 2.000000e-01 : f32
    %31 = vector.broadcast %cst_23 : f32 to vector<16x120xf32>
    %32 = arith.mulf %31, %30 : vector<16x120xf32>
    %33 = arith.maximumf %30, %32 : vector<16x120xf32>
    %c0_24 = arith.constant 0 : index
    %c0_25 = arith.constant 0 : index
    %34 = vector.load %arg8[%c0_24, %c0_25] : memref<120x84xf32, #tpu.memory_space<vmem>>, vector<120x84xf32>
    %cst_26 = arith.constant dense<0.000000e+00> : vector<16x84xf32>
    %35 = tpu.matmul %33, %34, %cst_26 {dimension_numbers = #tpu.dot_dimension_numbers<[1], [0], [0], [1], [0, 0, 1, 1], [], []>} : vector<16x120xf32>, vector<120x84xf32>, vector<16x84xf32> -> vector<16x84xf32>
    %c0_27 = arith.constant 0 : index
    %c0_28 = arith.constant 0 : index
    %36 = vector.load %arg9[%c0_27, %c0_28] : memref<1x84xf32, #tpu.memory_space<vmem>>, vector<1x84xf32>
    %37 = vector.broadcast %36 : vector<1x84xf32> to vector<16x84xf32>
    %38 = arith.addf %35, %37 : vector<16x84xf32>
    %cst_29 = arith.constant 2.000000e-01 : f32
    %39 = vector.broadcast %cst_29 : f32 to vector<16x84xf32>
    %40 = arith.mulf %39, %38 : vector<16x84xf32>
    %41 = arith.maximumf %38, %40 : vector<16x84xf32>
    %c0_30 = arith.constant 0 : index
    %c0_31 = arith.constant 0 : index
    %42 = vector.load %arg10[%c0_30, %c0_31] : memref<84x8xf32, #tpu.memory_space<vmem>>, vector<84x8xf32>
    %cst_32 = arith.constant dense<0.000000e+00> : vector<16x8xf32>
    %43 = tpu.matmul %41, %42, %cst_32 {dimension_numbers = #tpu.dot_dimension_numbers<[1], [0], [0], [1], [0, 0, 1, 1], [], []>} : vector<16x84xf32>, vector<84x8xf32>, vector<16x8xf32> -> vector<16x8xf32>
    %c0_33 = arith.constant 0 : index
    %c0_34 = arith.constant 0 : index
    %44 = vector.load %arg11[%c0_33, %c0_34] : memref<1x8xf32, #tpu.memory_space<vmem>>, vector<1x8xf32>
    %45 = vector.broadcast %44 : vector<1x8xf32> to vector<16x8xf32>
    %46 = arith.addf %43, %45 : vector<16x8xf32>
    %c0_35 = arith.constant 0 : index
    %c0_36 = arith.constant 0 : index
    %47 = vector.load %arg12[%c0_35, %c0_36] : memref<16x8xf32, #tpu.memory_space<vmem>>, vector<16x8xf32>
    tpu.vector_store %arg12[%c0_35, %c0_36], %46 {strides = array<i32>} : memref<16x8xf32, #tpu.memory_space<vmem>>, vector<16x8xf32>,
    return
  }
  func.func @transform_0(%arg0: i32) -> (i32, i32) {
    %c0_i32 = arith.constant 0 : i32
    %c0_i32_0 = arith.constant 0 : i32
    return %arg0, %c0_i32 : i32, i32
  }
  func.func @transform_1(%arg0: i32) -> (i32, i32) {
    %c0_i32 = arith.constant 0 : i32
    %c0_i32_0 = arith.constant 0 : i32
    %c0_i32_1 = arith.constant 0 : i32
    return %c0_i32, %c0_i32_0 : i32, i32
  }
  func.func @transform_2(%arg0: i32) -> (i32, i32) {
    %c0_i32 = arith.constant 0 : i32
    %c0_i32_0 = arith.constant 0 : i32
    %c0_i32_1 = arith.constant 0 : i32
    return %c0_i32, %c0_i32_0 : i32, i32
  }
  func.func @transform_3(%arg0: i32) -> (i32, i32) {
    %c0_i32 = arith.constant 0 : i32
    %c0_i32_0 = arith.constant 0 : i32
    %c0_i32_1 = arith.constant 0 : i32
    return %c0_i32, %c0_i32_0 : i32, i32
  }
  func.func @transform_4(%arg0: i32) -> (i32, i32) {
    %c0_i32 = arith.constant 0 : i32
    %c0_i32_0 = arith.constant 0 : i32
    %c0_i32_1 = arith.constant 0 : i32
    return %c0_i32, %c0_i32_0 : i32, i32
  }
  func.func @transform_5(%arg0: i32) -> (i32, i32) {
    %c0_i32 = arith.constant 0 : i32
    %c0_i32_0 = arith.constant 0 : i32
    %c0_i32_1 = arith.constant 0 : i32
    return %c0_i32, %c0_i32_0 : i32, i32
  }
  func.func @transform_6(%arg0: i32) -> (i32, i32) {
    %c0_i32 = arith.constant 0 : i32
    %c0_i32_0 = arith.constant 0 : i32
    %c0_i32_1 = arith.constant 0 : i32
    return %c0_i32, %c0_i32_0 : i32, i32
  }
  func.func @transform_7(%arg0: i32) -> (i32, i32) {
    %c0_i32 = arith.constant 0 : i32
    %c0_i32_0 = arith.constant 0 : i32
    %c0_i32_1 = arith.constant 0 : i32
    return %c0_i32, %c0_i32_0 : i32, i32
  }
  func.func @transform_8(%arg0: i32) -> (i32, i32) {
    %c0_i32 = arith.constant 0 : i32
    %c0_i32_0 = arith.constant 0 : i32
    %c0_i32_1 = arith.constant 0 : i32
    return %c0_i32, %c0_i32_0 : i32, i32
  }
  func.func @transform_9(%arg0: i32) -> (i32, i32) {
    %c0_i32 = arith.constant 0 : i32
    %c0_i32_0 = arith.constant 0 : i32
    %c0_i32_1 = arith.constant 0 : i32
    return %c0_i32, %c0_i32_0 : i32, i32
  }
  func.func @transform_10(%arg0: i32) -> (i32, i32) {
    %c0_i32 = arith.constant 0 : i32
    %c0_i32_0 = arith.constant 0 : i32
    %c0_i32_1 = arith.constant 0 : i32
    return %c0_i32, %c0_i32_0 : i32, i32
  }
  func.func @transform_11(%arg0: i32) -> (i32, i32) {
    %c0_i32 = arith.constant 0 : i32
    %c0_i32_0 = arith.constant 0 : i32
    return %arg0, %c0_i32 : i32, i32
  }
}

</mosaic_0001>

<bundles_post_ra>
// kernel: tpu_custom_call.1
= control target key start
LH: loop header
LB: loop body
LE: loop exit
PB: predicated region body
PF: predicated region fallthrough
CT: control target
= control target key end

     0   :  { %vm46_vm0 = vcmask 367616   ;;  %vm53_vm1 = vcmask 1044480   ;;  %vm1247_vm2 = vmmov 1   ;;  %vm523_vm4 = vcmask 1045504   ;;  %s1575_s1 = inlined_call_operand.vmem [shape: f32[45,512], index: 1, kind: input, shape index: {}]   ;;  %s1576_s0 = inlined_call_operand.vmem [shape: f32[16,45], index: 0, kind: input, shape index: {}]   ;;  %s1577_s3 = inlined_call_operand.vmem [shape: f32[128,30], index: 3, kind: input, shape index: {}]   ;;  %s1578_s2 = inlined_call_operand.vmem [shape: f32[1,128], index: 2, kind: input, shape index: {}]   ;;  %s1579_s5 = inlined_call_operand.vmem [shape: f32[30,120], index: 5, kind: input, shape index: {}]   ;;  %s1580_s7 = inlined_call_operand.vmem [shape: f32[120,84], index: 7, kind: input, shape index: {}]   ;;  %s1581_s4 = inlined_call_operand.vmem [shape: f32[1,30], index: 4, kind: input, shape index: {}]   ;;  %s1582_s9 = inlined_call_operand.vmem [shape: f32[84,8], index: 9, kind: input, shape index: {}]   ;;  %s1583_s6 = inlined_call_operand.vmem [shape: f32[1,120], index: 6, kind: input, shape index: {}]   ;;  %s1584_s8 = inlined_call_operand.vmem [shape: f32[1,84], index: 8, kind: input, shape index: {}]   ;;  %s1585_s10 = inlined_call_operand.vmem [shape: f32[1,8], index: 10, kind: input, shape index: {}]   ;;  %s1586_s11 = inlined_call_operand.vmem [shape: f32[16,8], index: 11, kind: output, shape index: {}]  }
   0x1   :  { %v40_v0 = vld [vmem:[%s1575_s1] sm:$0xff]  ;;  %v218_v9 = vld [vmem:[%s1575_s1 + $0x10] sm:$0xff]  ;;  %vm1334_vm3 = vmpackc.low %vm53_vm1, %vm1247_vm2  ;;  %vm516_vm6 = vcmask 244736   ;;  %vm628_vm7 = vcmask 982016   ;;  %vm739_vm8 = vcmask 1043456   ;;  %vm732_vm9 = vcmask 687104  }
   0x2   :  { %v41_v1 = vld [vmem:[%s1575_s1 + $0x20] sm:$0xff]  ;;  %v219_v11 = vld [vmem:[%s1575_s1 + $0x30] sm:$0xff]  ;;  %v132_v13 = vld [vmem:[%s1575_s1 + $0x8] sm:$0xff]  ;;  %vm818_vm10 = vcmask 64512  }
   0x3   :  { %v42_v2 = vld [vmem:[%s1575_s1 + $0x40] sm:$0xff]  ;;  %v1100_v3 = vpack.c.bf16 %v41_v1, %v40_v0  ;;  %v1128_v14 = vpack.c.bf16 %v219_v11, %v218_v9  ;;  %v220_v15 = vld [vmem:[%s1575_s1 + $0x50] sm:$0xff]  ;;  %v133_v17 = vld [vmem:[%s1575_s1 + $0x28] sm:$0xff] }
   0x4   :  { %v43_v4 = vld [vmem:[%s1575_s1 + $0x60] sm:$0xff]  ;;  %v221_v16 = vld [vmem:[%s1575_s1 + $0x70] sm:$0xff]  ;;  %v1114_v21 = vpack.c.bf16 %v133_v17, %v132_v13  ;;  %v134_v23 = vld [vmem:[%s1575_s1 + $0x48] sm:$0xff] }
   0x5   :  { %v1104_v5 = vpack.c.bf16 %v43_v4, %v42_v2  ;;  %v44_v6 = vld [vmem:[%s1575_s1 + $0x80] sm:$0xff]  ;;  %1101 = vmatprep.subr.bf16.mxu1 %v1100_v3  ;;  %v1132_v18 = vpack.c.bf16 %v221_v16, %v220_v15  ;;  %v222_v19 = vld [vmem:[%s1575_s1 + $0x90] sm:$0xff]  ;;  %1129 = vmatprep.subr.bf16.mxu0 %v1128_v14  ;;  %v135_v24 = vld [vmem:[%s1575_s1 + $0x68] sm:$0xff] }
   0x6   :  { %v45_v7 = vld [vmem:[%s1575_s1 + $0xa0] sm:$0x1f]  ;;  %1103 = vmatpush3.bf16.msra.mxu1 %v1100_v3  ;;  %v223_v20 = vld [vmem:[%s1575_s1 + $0xb0] sm:$0x1f]  ;;  %1131 = vmatpush3.bf16.msra.mxu0 %v1128_v14  ;;  %v39_v25 = vld [vmem:[%s1576_s0 + $0x8] sm:$0xff]  ;;  %v1118_v26 = vpack.c.bf16 %v135_v24, %v134_v23 }
   0x7   :  { %v38_v8 = vld [vmem:[%s1576_s0] sm:$0xff]  ;;  %1105 = vmatprep.subr.bf16.mxu1 %v1104_v5  ;;  %v1108_v12 = vpack.c.bf16 %v45_v7, %v44_v6  ;;  %1133 = vmatprep.subr.bf16.mxu0 %v1132_v18  ;;  %v1136_v22 = vpack.c.bf16 %v223_v20, %v222_v19  ;;  %v136_v27 = vld [vmem:[%s1575_s1 + $0x88] sm:$0xff]  ;;  %v304_v30 = vld [vmem:[%s1575_s1 + $0x18] sm:$0xff] }
   0x8   :  { %948 = vmatprep.mubr.msk.f32.mxu1 %vm46_vm0, %v38_v8  ;;  %978 = vmatprep.mubr.msk.f32.mxu0 %vm46_vm0, %v38_v8  ;;  %v137_v28 = vld [vmem:[%s1575_s1 + $0xa8] sm:$0x1f]  ;;  %v305_v31 = vld [vmem:[%s1575_s1 + $0x38] sm:$0xff]  ;;  %v403_v39 = vld [vmem:[%s1577_s3] sm:$0xff] }
   0x9   :  { %v1122_v29 = vpack.c.bf16 %v137_v28, %v136_v27  ;;  %v1142_v32 = vpack.c.bf16 %v305_v31, %v304_v30  ;;  %v306_v33 = vld [vmem:[%s1575_s1 + $0x58] sm:$0xff]  ;;  %v404_v40 = vld [vmem:[%s1577_s3 + $0x8] sm:$0xff]  ;;  %v405_v42 = vld [vmem:[%s1577_s3 + $0x10] sm:$0xff] }
   0xa   :  { %1107 = vmatpush3.bf16.msra.mxu1 %v1104_v5  ;;  %1135 = vmatpush3.bf16.msra.mxu0 %v1132_v18  ;;  %v307_v34 = vld [vmem:[%s1575_s1 + $0x78] sm:$0xff]  ;;  %v1156_v41 = vpack.c.bf16 %v404_v40, %v403_v39  ;;  %v407_v45 = vld [vmem:[%s1577_s3 + $0x20] sm:$0xff]  ;;  %v408_v46 = vld [vmem:[%s1577_s3 + $0x28] sm:$0xff] }
   0xb   :  { %1110 = vmatprep.subr.msk.bf16.mxu1 %vm1334_vm3, %v1108_v12  ;;  %1138 = vmatprep.subr.msk.bf16.mxu0 %vm1334_vm3, %v1136_v22  ;;  %v1146_v35 = vpack.c.bf16 %v307_v34, %v306_v33  ;;  %v308_v36 = vld [vmem:[%s1575_s1 + $0x98] sm:$0xff]  ;;  %v1164_v47 = vpack.c.bf16 %v408_v46, %v407_v45  ;;  %v409_v48 = vld [vmem:[%s1577_s3 + $0x30] sm:$0xff]  ;;  %v411_v51 = vld [vmem:[%s1577_s3 + $0x40] sm:$0xff] }
   0xc   :  { %v309_v37 = vld [vmem:[%s1575_s1 + $0xb8] sm:$0x1f]  ;;  %v412_v52 = vld [vmem:[%s1577_s3 + $0x48] sm:$0xff]  ;;  %v413_v53 = vld [vmem:[%s1577_s3 + $0x50] sm:$0xff] }
   0xd   :  { %v1150_v38 = vpack.c.bf16 %v309_v37, %v308_v36  ;;  %v406_v43 = vld [vmem:[%s1577_s3 + $0x18] sm:$0xff]  ;;  %v1172_v54 = vpack.c.bf16 %v412_v52, %v411_v51  ;;  %v415_v57 = vld [vmem:[%s1577_s3 + $0x60] sm:$0xff]  ;;  %v416_v58 = vld [vmem:[%s1577_s3 + $0x68] sm:$0xff] }
   0xe   :  { %1113 = vmatpush3.bf16.msk.msra.mxu1 %vm1334_vm3, %v1108_v12  ;;  %1141 = vmatpush3.bf16.msk.msra.mxu0 %vm1334_vm3, %v1136_v22  ;;  %v1160_v44 = vpack.c.bf16 %v406_v43, %v405_v42  ;;  %v410_v49 = vld [vmem:[%s1577_s3 + $0x38] sm:$0xff]  ;;  %v1180_v59 = vpack.c.bf16 %v416_v58, %v415_v57  ;;  %v417_v60 = vld [vmem:[%s1577_s3 + $0x70] sm:$0xff]  ;;  %v837_v10 = vld [vmem:[%s1578_s2] ss:$0 sm:$0xff] }
   0xf   :  { %1115 = vmatprep.subr.bf16.mxu1 %v1114_v21  ;;  %1157 = vmatprep.subr.bf16.mxu0 %v1156_v41  ;;  %v1168_v50 = vpack.c.bf16 %v410_v49, %v409_v48  ;;  %v414_v55 = vld [vmem:[%s1577_s3 + $0x58] sm:$0xff]  ;;  %v505_v20 = vld [vmem:[%s1579_s5] sm:$0xff]  ;;  %v507_v23 = vld [vmem:[%s1579_s5 + $0x10] sm:$0xff] }
  0x10   :  { %v1176_v56 = vpack.c.bf16 %v414_v55, %v413_v53  ;;  %v418_v61 = vld [vmem:[%s1577_s3 + $0x78] sm:$0xff]  ;;  %vm1193_vm5 = vmpackc.low %vm523_vm4, %vm1247_vm2  ;;  %v607_v27 = vld [vmem:[%s1580_s7 + $0x8] sm:$0xff] }
  0x11   :  { %949 = vmatmul.mubr.msk.f32.vlgmr.msra.gmra.mrb[0].mxu1 %vm46_vm0, %v39_v25  ;;  %979 = vmatmul.mubr.msk.f32.vlgmr.msra.gmra.mrb[0].mxu0 %vm46_vm0, %v39_v25  ;;  %v1184_v62 = vpack.c.bf16 %v418_v61, %v417_v60  ;;  %v508_v24 = vld [vmem:[%s1579_s5 + $0x18] sm:$0x3f]  ;;  %v608_v36 = vld [vmem:[%s1580_s7 + $0x10] sm:$0xff]  ;;  %v611_v42 = vld [vmem:[%s1580_s7 + $0x28] sm:$0xff] }
  0x12   :  { %1117 = vmatpush3.bf16.msra.mxu1 %v1114_v21  ;;  %963 = vmatprep.mubr.msk.f32.mxu1 %vm46_vm0, %v38_v8  ;;  %v506_v21 = vld [vmem:[%s1579_s5 + $0x8] sm:$0xff]  ;;  %v609_v37 = vld [vmem:[%s1580_s7 + $0x18] sm:$0xff]  ;;  %v618_v53 = vld [vmem:[%s1580_s7 + $0x60] sm:$0xff] }
  0x13   :  { %1119 = vmatprep.subr.bf16.mxu1 %v1118_v26  ;;  %1159 = vmatpush3.bf16.msra.mxu0 %v1156_v41  ;;  %v1188_v22 = vpack.c.bf16 %v506_v21, %v505_v20  ;;  %v1202_v40 = vpack.c.bf16 %v609_v37, %v608_v36  ;;  %v610_v41 = vld [vmem:[%s1580_s7 + $0x20] sm:$0xff]  ;;  %v613_v45 = vld [vmem:[%s1580_s7 + $0x38] sm:$0xff]  ;;  %v615_v48 = vld [vmem:[%s1580_s7 + $0x48] sm:$0xff] }
  0x14   :  { %1161 = vmatprep.subr.bf16.mxu0 %v1160_v44  ;;  %v1206_v43 = vpack.c.bf16 %v611_v42, %v610_v41  ;;  %v617_v51 = vld [vmem:[%s1580_s7 + $0x58] sm:$0xff]  ;;  %v714_v57 = vld [vmem:[%s1582_s9] sm:$0xff]  ;;  %v715_v58 = vld [vmem:[%s1582_s9 + $0x8] sm:$0xff] }
  0x15   :  { %v1226_v60 = vpack.c.bf16 %v715_v58, %v714_v57  ;;  %v717_v61 = vld [vmem:[%s1582_s9 + $0x18] sm:$0xff] }
  0x16   :  { %1121 = vmatpush3.bf16.msra.mxu1 %v1118_v26  ;;  %v606_v26 = vld [vmem:[%s1580_s7] sm:$0xff] }
  0x17   :  { %1124 = vmatprep.subr.msk.bf16.mxu1 %vm1334_vm3, %v1122_v29  ;;  %1163 = vmatpush3.bf16.msra.mxu0 %v1160_v44  ;;  %v1198_v28 = vpack.c.bf16 %v607_v27, %v606_v26  ;;  %v612_v44 = vld [vmem:[%s1580_s7 + $0x30] sm:$0xff]  ;;  %v846_v27 = vld [vmem:[%s1585_s10] ss:$0 sm:$0xff] }
  0x18   :  { %1165 = vmatprep.subr.bf16.mxu0 %v1164_v47  ;;  %v1210_v46 = vpack.c.bf16 %v613_v45, %v612_v44 }
  0x1a   :  { %1127 = vmatpush3.bf16.msk.msra.mxu1 %vm1334_vm3, %v1122_v29  ;;  %v838_v29 = vld [vmem:[%s1581_s4] ss:$0 sm:$0xff] }
  0x1b   :  { %1143 = vmatprep.subr.bf16.mxu1 %v1142_v32  ;;  %1167 = vmatpush3.bf16.msra.mxu0 %v1164_v47  ;;  %v614_v47 = vld [vmem:[%s1580_s7 + $0x40] sm:$0xff] }
  0x1c   :  { %1169 = vmatprep.subr.bf16.mxu0 %v1168_v50  ;;  %v1214_v49 = vpack.c.bf16 %v615_v48, %v614_v47 }
  0x1d   :  { %964 = vmatmul.mubr.msk.f32.vlgmr.msra.gmra.mrb[2].mxu1 %vm46_vm0, %v39_v25 }
  0x1e   :  { %1145 = vmatpush3.bf16.msra.mxu1 %v1142_v32  ;;  %993 = vmatprep.mubr.msk.f32.mxu1 %vm46_vm0, %v38_v8 }
  0x1f   :  { %1147 = vmatprep.subr.bf16.mxu1 %v1146_v35  ;;  %1171 = vmatpush3.bf16.msra.mxu0 %v1168_v50  ;;  %v616_v50 = vld [vmem:[%s1580_s7 + $0x50] sm:$0xff] }
  0x20   :  { %1173 = vmatprep.subr.bf16.mxu0 %v1172_v54  ;;  %v1218_v52 = vpack.c.bf16 %v617_v51, %v616_v50 }
  0x22   :  { %1149 = vmatpush3.bf16.msra.mxu1 %v1146_v35 }
  0x23   :  { %1152 = vmatprep.subr.msk.bf16.mxu1 %vm1334_vm3, %v1150_v38  ;;  %1175 = vmatpush3.bf16.msra.mxu0 %v1172_v54  ;;  %v619_v54 = vld [vmem:[%s1580_s7 + $0x68] sm:$0xff] }
  0x24   :  { %1177 = vmatprep.subr.bf16.mxu0 %v1176_v56  ;;  %v1222_v55 = vpack.c.bf16 %v619_v54, %v618_v53 }
  0x26   :  { %1155 = vmatpush3.bf16.msk.msra.mxu1 %vm1334_vm3, %v1150_v38 }
  0x27   :  { %1179 = vmatpush3.bf16.msra.mxu0 %v1176_v56  ;;  %1189 = vmatprep.subr.bf16.mxu1 %v1188_v22  ;;  %v620_v56 = vld [vmem:[%s1580_s7 + $0x70] sm:$0xff] }
  0x28   :  { %1181 = vmatprep.subr.bf16.mxu0 %v1180_v59 }
  0x29   :  { %994 = vmatmul.mubr.msk.f32.vlgmr.msra.gmra.mrb[4].mxu1 %vm46_vm0, %v39_v25  ;;  %v1192_v25 = vpack.c.bf16 %v508_v24, %v507_v23 }
  0x2a   :  { %1191 = vmatpush3.bf16.msra.mxu1 %v1188_v22 }
  0x2b   :  { %1183 = vmatpush3.bf16.msra.mxu0 %v1180_v59  ;;  %1194 = vmatprep.subr.msk.bf16.mxu1 %vm1193_vm5, %v1192_v25  ;;  %v716_v59 = vld [vmem:[%s1582_s9 + $0x10] sm:$0xff] }
  0x2c   :  { %1185 = vmatprep.subr.bf16.mxu0 %v1184_v62 }
  0x2e   :  { %1197 = vmatpush3.bf16.msk.msra.mxu1 %vm1193_vm5, %v1192_v25 }
  0x2f   :  { %1187 = vmatpush3.bf16.msra.mxu0 %v1184_v62  ;;  %1199 = vmatprep.subr.bf16.mxu1 %v1198_v28  ;;  %v1230_v62 = vpack.c.bf16 %v717_v61, %v716_v59 }
  0x30   :  { %1227 = vmatprep.subr.bf16.mxu0 %v1226_v60 }
  0xe4   :  { %v950_v63 = vpop.f32.mrb[0].mxu1  ;;  %v980_v1 = vpop.f32.mrb[0].mxu0 }
  0xe5   :  { %v123_v0 = vpop.f32.mrb[1].mxu1  ;;  %v293_v2 = vpop.f32.mrb[1].mxu0 }
  0xf0   :  { %v965_v3 = vpop.f32.mrb[2].mxu1 }
  0xf1   :  { %v217_v4 = vmax.f32 %v950_v63, %v965_v3  ;;  %v207_v5 = vpop.f32.mrb[3].mxu1  ;;  %v718_v63 = vld [vmem:[%s1582_s9 + $0x20] sm:$0xff]  ;;  %v721_v3 = vld [vmem:[%s1582_s9 + $0x38] sm:$0xff] }
  0xf2   :  { %v216_v6 = vmax.f32 %v123_v0, %v207_v5  ;;  %v719_v0 = vld [vmem:[%s1582_s9 + $0x28] sm:$0xff]  ;;  %v839_v5 = vld [vmem:[%s1583_s6] ss:$0 sm:$0xff] }
  0xf3   :  { %v303_v7 = vmax.f32 %v217_v4, %v980_v1  ;;  %v1234_v1 = vpack.c.bf16 %v719_v0, %v718_v63 }
  0xf4   :  { %v302_v8 = vmax.f32 %v216_v6, %v293_v2  ;;  %v720_v2 = vld [vmem:[%s1582_s9 + $0x30] sm:$0xff] }
  0xf5   :  { %v1238_v4 = vpack.c.bf16 %v721_v3, %v720_v2 }
  0xfc   :  { %v995_v9 = vpop.f32.mrb[4].mxu1 }
  0xfd   :  { %v389_v11 = vmax.f32 %v303_v7, %v995_v9  ;;  %v379_v12 = vpop.f32.mrb[5].mxu1 }
  0xfe   :  { %v388_v13 = vmax.f32 %v302_v8, %v379_v12 }
  0xff   :  { %v398_v14 = vadd.f32 %v837_v10, %v389_v11 }
 0x100   :  { %v397_v15 = vadd.f32 %v837_v10, %v388_v13 }
 0x101   :  { %v400_v16 = vmul.f32 0.2, %v398_v14 }
 0x102   :  { %v399_v17 = vmul.f32 0.2, %v397_v15 }
 0x103   :  { %v402_v19 = vmax.f32 %v398_v14, %v400_v16  ;;  %v722_v14 = vld [vmem:[%s1582_s9 + $0x40] sm:$0xff] }
 0x104   :  { %v401_v18 = vmax.f32 %v397_v15, %v399_v17  ;;  %v723_v15 = vld [vmem:[%s1582_s9 + $0x48] sm:$0xff]  ;;  %v724_v17 = vld [vmem:[%s1582_s9 + $0x50] sm:$0xf] }
 0x105   :  { %v1242_v16 = vpack.c.bf16 %v723_v15, %v722_v14 }
 0x106   :  { %1028 = vmatprep.mubr.f32.mxu0 %v401_v18  ;;  %v843_v18 = vld [vmem:[%s1584_s8] ss:$0 sm:$0xff] }
 0x107   :  { %1029 = vmatmul.mubr.f32.vlgmr.msra.gmra.mrb[2].mxu0 %v402_v19 }
 0x108   :  { %1229 = vmatpush3.bf16.msra.mxu0 %v1226_v60 }
 0x109   :  { %1231 = vmatprep.subr.bf16.mxu0 %v1230_v62 }
 0x10c   :  { %1233 = vmatpush3.bf16.msra.mxu0 %v1230_v62 }
 0x10d   :  { %1235 = vmatprep.subr.bf16.mxu0 %v1234_v1 }
 0x110   :  { %1237 = vmatpush3.bf16.msra.mxu0 %v1234_v1 }
 0x111   :  { %1239 = vmatprep.subr.bf16.mxu0 %v1238_v4 }
 0x114   :  { %1241 = vmatpush3.bf16.msra.mxu0 %v1238_v4 }
 0x115   :  { %1243 = vmatprep.subr.bf16.mxu0 %v1242_v16 }
 0x118   :  { %1245 = vmatpush3.bf16.msra.mxu0 %v1242_v16 }
 0x119   :  { %1095 = vmatprep.subr.msk.mxu0 %vm739_vm8, %v724_v17 }
 0x11c   :  { %1096 = vmatpush3.msk.msra.mxu0 %vm739_vm8, %v724_v17 }
 0x1da   :  { %v1030_v30 = vpop.f32.mrb[2].mxu0 }
 0x1db   :  { %v498_v31 = vadd.f32 %v1030_v30, %v838_v29  ;;  %v492_v32 = vpop.f32.mrb[3].mxu0 }
 0x1dc   :  { %v493_v33 = vadd.f32 %v838_v29, %v492_v32 }
 0x1dd   :  { %v502_v34 = vmul.f32 0.2, %v498_v31 }
 0x1de   :  { %v501_v35 = vmul.f32 0.2, %v493_v33 }
 0x1df   :  { %v504_v39 = vmax.f32 %v498_v31, %v502_v34 }
 0x1e0   :  { %v503_v38 = vmax.f32 %v493_v33, %v501_v35 }
 0x1e2   :  { %1039 = vmatprep.mubr.msk.f32.mxu1 %vm516_vm6, %v503_v38 }
 0x1e3   :  { %1040 = vmatmul.mubr.msk.f32.vlgmr.msra.gmra.mrb[6].mxu1 %vm516_vm6, %v504_v39 }
 0x1e4   :  { %1201 = vmatpush3.bf16.msra.mxu1 %v1198_v28 }
 0x1e5   :  { %1203 = vmatprep.subr.bf16.mxu1 %v1202_v40 }
 0x1e8   :  { %1205 = vmatpush3.bf16.msra.mxu1 %v1202_v40 }
 0x1e9   :  { %1207 = vmatprep.subr.bf16.mxu1 %v1206_v43 }
 0x1ec   :  { %1209 = vmatpush3.bf16.msra.mxu1 %v1206_v43 }
 0x1ed   :  { %1211 = vmatprep.subr.bf16.mxu1 %v1210_v46 }
 0x1f0   :  { %1213 = vmatpush3.bf16.msra.mxu1 %v1210_v46 }
 0x1f1   :  { %1215 = vmatprep.subr.bf16.mxu1 %v1214_v49 }
 0x1f4   :  { %1217 = vmatpush3.bf16.msra.mxu1 %v1214_v49 }
 0x1f5   :  { %1219 = vmatprep.subr.bf16.mxu1 %v1218_v52 }
 0x1f8   :  { %1221 = vmatpush3.bf16.msra.mxu1 %v1218_v52 }
 0x1f9   :  { %1223 = vmatprep.subr.bf16.mxu1 %v1222_v55 }
 0x1fc   :  { %1225 = vmatpush3.bf16.msra.mxu1 %v1222_v55 }
 0x1fd   :  { %1070 = vmatprep.subr.mxu1 %v620_v56 }
 0x200   :  { %1071 = vmatpush3.msra.mxu1 %v620_v56 }
 0x2b6   :  { %v1041_v6 = vpop.f32.mrb[6].mxu1 }
 0x2b7   :  { %v599_v7 = vadd.f32 %v1041_v6, %v839_v5  ;;  %v593_v8 = vpop.f32.mrb[7].mxu1 }
 0x2b8   :  { %v594_v9 = vadd.f32 %v839_v5, %v593_v8 }
 0x2b9   :  { %v603_v10 = vmul.f32 0.2, %v599_v7 }
 0x2ba   :  { %v602_v11 = vmul.f32 0.2, %v594_v9 }
 0x2bb   :  { %v605_v13 = vmax.f32 %v599_v7, %v603_v10 }
 0x2bc   :  { %v604_v12 = vmax.f32 %v594_v9, %v602_v11 }
 0x2be   :  { %1072 = vmatprep.mubr.msk.f32.mxu1 %vm628_vm7, %v604_v12 }
 0x2bf   :  { %1073 = vmatmul.mubr.msk.f32.vlgmr.msra.gmra.mrb[8].mxu1 %vm628_vm7, %v605_v13 }
 0x392   :  { %v1074_v19 = vpop.f32.mrb[8].mxu1 }
 0x393   :  { %v707_v20 = vadd.f32 %v1074_v19, %v843_v18  ;;  %v701_v21 = vpop.f32.mrb[9].mxu1 }
 0x394   :  { %v702_v22 = vadd.f32 %v843_v18, %v701_v21 }
 0x395   :  { %v711_v23 = vmul.f32 0.2, %v707_v20 }
 0x396   :  { %v710_v24 = vmul.f32 0.2, %v702_v22 }
 0x397   :  { %v713_v26 = vmax.f32 %v707_v20, %v711_v23 }
 0x398   :  { %v712_v25 = vmax.f32 %v702_v22, %v710_v24 }
 0x39a   :  { %1097 = vmatprep.mubr.msk.f32.mxu0 %vm732_vm9, %v712_v25 }
 0x39b   :  { %1098 = vmatmul.mubr.msk.f32.vlgmr.msra.gmra.mrb[4].mxu0 %vm732_vm9, %v713_v26 }
 0x46e   :  { %v1099_v28 = vpop.f32.mrb[4].mxu0 }
 0x46f   :  { %v815_v29 = vadd.f32 %v1099_v28, %v846_v27  ;;  %v809_v30 = vpop.f32.mrb[5].mxu0 }
 0x470   :  { %v810_v31 = vadd.f32 %v846_v27, %v809_v30 }
 0x471   :  { %820 = vst.msk [vmem:[%s1586_s11 + $0x8] sm:$0xff] %vm818_vm10, %v815_v29 }
 0x472   :  { %819 = vst.msk [vmem:[%s1586_s11] sm:$0xff] %vm818_vm10, %v810_v31 }

</bundles_post_ra>
